<compile_context>
chip_gen: v5e
topology: v5e:2x2
jax: 0.10.0
libtpu: 0.0.40
codegen_flags: <defaults>
</compile_context>

<pallas_src>
import jax
import jax.numpy as jnp
from jax.experimental import pallas as pl
from jax.experimental.pallas import tpu as pltpu

INPUT_SIZE = 30   # ['Amount', 'Time'] + V1..V28
NUM_UNITS = 10
HIDDEN2 = 10
NUM_CLASSES = 2


def _round_up(n, m):
    return ((n + m - 1) // m) * m


def _mlp_kernel(x_ref, w0_ref, b0_ref, w1_ref, b1_ref, wd_ref, bd_ref, o_ref):
    x = x_ref[...]                                   # (tb, 30), as stored in HBM
    dn = (((1,), (1,)), ((), ()))                    # contract last dims: A @ B^T

    # F.normalize(X): x / max(||x||, 1e-12).  ||x||^2 is produced directly in the
    # lane-dense (1, tb) orientation via a ones-row matmul (MXU), so the rsqrt
    # below costs only tb/128 EUP pushes instead of tb/8.
    ones_row = jnp.ones((1, INPUT_SIZE), jnp.float32)
    sq = jax.lax.dot_general(ones_row, x * x, dn,
                             preferred_element_type=jnp.float32)        # (1, tb)
    inv = jax.lax.rsqrt(jnp.maximum(sq, 1e-24))                         # (1, tb)

    # dense0 (30 -> 10) + ReLU.  The normalize scale is a per-batch (per-lane)
    # scalar, so it commutes with the matmul: W0 @ (x*inv)^T == (W0 @ x^T) * inv.
    h0 = jax.lax.dot_general(w0_ref[...], x, dn,
                             preferred_element_type=jnp.float32)        # (10, tb)
    h0 = jnp.maximum(h0 * inv + b0_ref[...], 0.0)

    # dropout1: inference-mode dropout is the identity (no mask/scale applied).
    # TODO(synk): training-mode dropout (random mask + 1/(1-p) scale) not implemented.

    # dense1 (10 -> 10) + ReLU
    h1 = jnp.dot(w1_ref[...], h0, preferred_element_type=jnp.float32) + b1_ref[...]
    h1 = jnp.maximum(h1, 0.0)                                           # (10, tb)

    # output (10 -> 2) + softmax(dim=-1): for 2 classes softmax == sigmoid of the
    # logit difference; wd/bd hold (w2[1]-w2[0], b2[1]-b2[0]).
    d = jnp.dot(wd_ref[...], h1, preferred_element_type=jnp.float32) + bd_ref[...]  # (1, tb)
    p1 = 1.0 / (1.0 + jnp.exp(-d))                   # exp(-d)->inf gives p1=0, no NaN

    # Lane-dense output block (2, tb): two unmasked full-width row stores.
    o_ref[0:1, :] = 1.0 - p1
    o_ref[1:2, :] = p1


def mlp_forward(x, params, *, tb=None):
    """x: (B, 30) float32.  params: dict of PyTorch-convention (out, in) weights."""
    B, F = x.shape
    assert F == INPUT_SIZE

    if tb is None:
        # HBM/overhead-bound after the lane-density fix: use big batch tiles
        # (cap 4096, well under scoped VMEM on v5e/v6e/v7x) but keep >= 2 grid
        # steps when B allows so v7x's two TensorCores both get work on the
        # "parallel" axis.  Tiles must be a multiple of 128 for the lane-dense
        # (2, tb) output block.
        tb = min(4096, max(128, _round_up(pl.cdiv(B, 2), 128)))
    assert tb % 128 == 0, "tb must be a multiple of 128 (lane-dense output block)"

    # Pad the batch to a multiple of tb; zero rows stay finite (0 * rsqrt(1e-24)
    # = 0) and the extra output columns are sliced off, so no in-kernel masking.
    Bp = _round_up(B, tb)
    if Bp != B:
        x = jnp.pad(x, ((0, Bp - B), (0, 0)))

    # One-time layout prep (tiny tensors).  Weights stay in PyTorch (out, in)
    # orientation (no transpose needed for the batch-in-lanes matmuls); biases
    # become column vectors; the output head is the class1-minus-class0 diff.
    w0 = params["w0"]                                         # (10, 30)
    w1 = params["w1"]                                         # (10, 10)
    b0 = params["b0"].reshape(-1, 1)                          # (10, 1)
    b1 = params["b1"].reshape(-1, 1)                          # (10, 1)
    wd = (params["w2"][1] - params["w2"][0]).reshape(1, -1)   # (1, 10)
    bd = (params["b2"][1] - params["b2"][0]).reshape(1, 1)    # (1, 1)

    grid = (Bp // tb,)
    full = lambda a: pl.BlockSpec(a.shape, lambda i: (0, 0))
    out_t = pl.pallas_call(
        _mlp_kernel,
        out_shape=jax.ShapeDtypeStruct((NUM_CLASSES, Bp), jnp.float32),
        grid_spec=pltpu.PrefetchScalarGridSpec(
            num_scalar_prefetch=0,
            grid=grid,
            in_specs=[
                pl.BlockSpec((tb, F), lambda i: (i, 0)),      # x tile (contiguous DMA)
                full(w0), full(b0),                           # dense0
                full(w1), full(b1),                           # dense1
                full(wd), full(bd),                           # output head (diff form)
            ],
            # Lane-dense output: (2, tb) blocks tiled along the lane axis.
            out_specs=pl.BlockSpec((NUM_CLASSES, tb), lambda i: (0, i)),
        ),
        compiler_params=pltpu.CompilerParams(
            dimension_semantics=("parallel",)),
    )(x, w0, b0, w1, b1, wd, bd)
    # Tiny (2, B) -> (B, 2) transpose outside the kernel.
    return out_t[:, :B].T


def mlp_reference(x, params):
    """Pure-JAX reference matching the PyTorch forward (inference mode)."""
    norm = jnp.sqrt(jnp.sum(x * x, axis=-1, keepdims=True))
    xn = x / jnp.maximum(norm, 1e-12)
    h0 = jax.nn.relu(xn @ params["w0"].T + params["b0"])
    h1 = jax.nn.relu(h0 @ params["w1"].T + params["b1"])
    logits = h1 @ params["w2"].T + params["b2"]
    return jax.nn.softmax(logits, axis=-1)


def init_params(key):
    """Deterministic init mimicking nn.Linear's U(-1/sqrt(fan_in), 1/sqrt(fan_in))."""
    ks = jax.random.split(key, 6)

    def linear(kw, kb, fan_in, fan_out):
        bound = 1.0 / jnp.sqrt(jnp.float32(fan_in))
        w = jax.random.uniform(kw, (fan_out, fan_in), jnp.float32, -bound, bound)
        b = jax.random.uniform(kb, (fan_out,), jnp.float32, -bound, bound)
        return w, b

    w0, b0 = linear(ks[0], ks[1], INPUT_SIZE, NUM_UNITS)
    w1, b1 = linear(ks[2], ks[3], NUM_UNITS, HIDDEN2)
    w2, b2 = linear(ks[4], ks[5], HIDDEN2, NUM_CLASSES)
    return dict(w0=w0, b0=b0, w1=w1, b1=b1, w2=w2, b2=b2)


if __name__ == "__main__":
    key = jax.random.PRNGKey(0)
    k_x, k_p, k_x2 = jax.random.split(key, 3)
    params = init_params(k_p)

    # Small batch.
    B = 16
    x = jax.random.normal(k_x, (B, INPUT_SIZE), jnp.float32) * 10.0
    out = jax.block_until_ready(mlp_forward(x, params))
    assert out.shape == (B, NUM_CLASSES)
    assert jnp.allclose(jnp.sum(out, axis=-1), 1.0, atol=1e-5)
    assert jnp.allclose(out, mlp_reference(x, params), atol=2e-5)

    # Batch not divisible by the tile size -> exercises the padding path.
    B2 = 37
    x2 = jax.random.normal(k_x2, (B2, INPUT_SIZE), jnp.float32) * 10.0
    out2 = jax.block_until_ready(mlp_forward(x2, params))
    assert out2.shape == (B2, NUM_CLASSES)
    assert jnp.allclose(jnp.sum(out2, axis=-1), 1.0, atol=1e-5)
    assert jnp.allclose(out2, mlp_reference(x2, params), atol=2e-5)

    print("KERNEL_OK")
</pallas_src>

<mosaic_0001>
module attributes {stable_mosaic.version = 11 : i64} {
  func.func @_mlp_kernel(%arg0: i32, %arg1: memref<128x30xf32, #tpu.memory_space<vmem>>, %arg2: memref<10x30xf32, #tpu.memory_space<vmem>>, %arg3: memref<10x1xf32, #tpu.memory_space<vmem>>, %arg4: memref<10x10xf32, #tpu.memory_space<vmem>>, %arg5: memref<10x1xf32, #tpu.memory_space<vmem>>, %arg6: memref<1x10xf32, #tpu.memory_space<vmem>>, %arg7: memref<1x1xf32, #tpu.memory_space<vmem>>, %arg8: memref<2x128xf32, #tpu.memory_space<vmem>>) attributes {dimension_semantics = [#tpu.dimension_semantics<parallel>], iteration_bounds = array<i64: 1>, scalar_prefetch = 0 : i64, scratch_operands = 0 : i64, tpu.core_type = #tpu.core_type<tc>, window_params = [{transform_indices = @transform_0, window_bounds = array<i64: 128, 30>}, {pipeline_mode = #tpu.pipeline_mode<synchronous>, transform_indices = @transform_1, window_bounds = array<i64: 10, 30>}, {pipeline_mode = #tpu.pipeline_mode<synchronous>, transform_indices = @transform_2, window_bounds = array<i64: 10, 1>}, {pipeline_mode = #tpu.pipeline_mode<synchronous>, transform_indices = @transform_3, window_bounds = array<i64: 10, 10>}, {pipeline_mode = #tpu.pipeline_mode<synchronous>, transform_indices = @transform_4, window_bounds = array<i64: 10, 1>}, {pipeline_mode = #tpu.pipeline_mode<synchronous>, transform_indices = @transform_5, window_bounds = array<i64: 1, 10>}, {pipeline_mode = #tpu.pipeline_mode<synchronous>, transform_indices = @transform_6, window_bounds = array<i64: 1, 1>}, {transform_indices = @transform_7, window_bounds = array<i64: 2, 128>}]} {
    %c0 = arith.constant 0 : index
    %c0_0 = arith.constant 0 : index
    %0 = vector.load %arg1[%c0, %c0_0] : memref<128x30xf32, #tpu.memory_space<vmem>>, vector<128x30xf32>
    %cst = arith.constant 1.000000e+00 : f32
    %1 = vector.broadcast %cst : f32 to vector<1x30xf32>
    %2 = arith.mulf %0, %0 : vector<128x30xf32>
    %cst_1 = arith.constant dense<0.000000e+00> : vector<1x128xf32>
    %3 = tpu.matmul %1, %2, %cst_1 {dimension_numbers = #tpu.dot_dimension_numbers<[1], [1], [0], [0], [0, 0, 1, 0], [], []>} : vector<1x30xf32>, vector<128x30xf32>, vector<1x128xf32> -> vector<1x128xf32>
    %cst_2 = arith.constant 1.000000e-24 : f32
    %4 = vector.broadcast %cst_2 : f32 to vector<1x128xf32>
    %5 = arith.maximumf %3, %4 : vector<1x128xf32>
    %6 = math.rsqrt %5 : vector<1x128xf32>
    %c0_3 = arith.constant 0 : index
    %c0_4 = arith.constant 0 : index
    %7 = vector.load %arg2[%c0_3, %c0_4] : memref<10x30xf32, #tpu.memory_space<vmem>>, vector<10x30xf32>
    %cst_5 = arith.constant dense<0.000000e+00> : vector<10x128xf32>
    %8 = tpu.matmul %7, %0, %cst_5 {dimension_numbers = #tpu.dot_dimension_numbers<[1], [1], [0], [0], [0, 0, 1, 0], [], []>} : vector<10x30xf32>, vector<128x30xf32>, vector<10x128xf32> -> vector<10x128xf32>
    %9 = vector.broadcast %6 : vector<1x128xf32> to vector<10x128xf32>
    %10 = arith.mulf %8, %9 : vector<10x128xf32>
    %c0_6 = arith.constant 0 : index
    %c0_7 = arith.constant 0 : index
    %11 = vector.load %arg3[%c0_6, %c0_7] : memref<10x1xf32, #tpu.memory_space<vmem>>, vector<10x1xf32>
    %12 = vector.broadcast %11 : vector<10x1xf32> to vector<10x128xf32>
    %13 = arith.addf %10, %12 : vector<10x128xf32>
    %cst_8 = arith.constant 0.000000e+00 : f32
    %14 = vector.broadcast %cst_8 : f32 to vector<10x128xf32>
    %15 = arith.maximumf %13, %14 : vector<10x128xf32>
    %c0_9 = arith.constant 0 : index
    %c0_10 = arith.constant 0 : index
    %16 = vector.load %arg4[%c0_9, %c0_10] : memref<10x10xf32, #tpu.memory_space<vmem>>, vector<10x10xf32>
    %cst_11 = arith.constant dense<0.000000e+00> : vector<10x128xf32>
    %17 = tpu.matmul %16, %15, %cst_11 {dimension_numbers = #tpu.dot_dimension_numbers<[1], [0], [0], [1], [0, 0, 1, 1], [], []>} : vector<10x10xf32>, vector<10x128xf32>, vector<10x128xf32> -> vector<10x128xf32>
    %c0_12 = arith.constant 0 : index
    %c0_13 = arith.constant 0 : index
    %18 = vector.load %arg5[%c0_12, %c0_13] : memref<10x1xf32, #tpu.memory_space<vmem>>, vector<10x1xf32>
    %19 = vector.broadcast %18 : vector<10x1xf32> to vector<10x128xf32>
    %20 = arith.addf %17, %19 : vector<10x128xf32>
    %cst_14 = arith.constant 0.000000e+00 : f32
    %21 = vector.broadcast %cst_14 : f32 to vector<10x128xf32>
    %22 = arith.maximumf %20, %21 : vector<10x128xf32>
    %c0_15 = arith.constant 0 : index
    %c0_16 = arith.constant 0 : index
    %23 = vector.load %arg6[%c0_15, %c0_16] : memref<1x10xf32, #tpu.memory_space<vmem>>, vector<1x10xf32>
    %cst_17 = arith.constant dense<0.000000e+00> : vector<1x128xf32>
    %24 = tpu.matmul %23, %22, %cst_17 {dimension_numbers = #tpu.dot_dimension_numbers<[1], [0], [0], [1], [0, 0, 1, 1], [], []>} : vector<1x10xf32>, vector<10x128xf32>, vector<1x128xf32> -> vector<1x128xf32>
    %c0_18 = arith.constant 0 : index
    %c0_19 = arith.constant 0 : index
    %25 = vector.load %arg7[%c0_18, %c0_19] : memref<1x1xf32, #tpu.memory_space<vmem>>, vector<1x1xf32>
    %26 = vector.broadcast %25 : vector<1x1xf32> to vector<1x128xf32>
    %27 = arith.addf %24, %26 : vector<1x128xf32>
    %cst_20 = arith.constant 0.000000e+00 : f32
    %28 = vector.broadcast %cst_20 : f32 to vector<1x128xf32>
    %29 = arith.subf %28, %27 : vector<1x128xf32>
    %30 = math.exp %29 : vector<1x128xf32>
    %cst_21 = arith.constant 1.000000e+00 : f32
    %31 = vector.broadcast %cst_21 : f32 to vector<1x128xf32>
    %32 = arith.addf %31, %30 : vector<1x128xf32>
    %cst_22 = arith.constant 1.000000e+00 : f32
    %33 = vector.broadcast %cst_22 : f32 to vector<1x128xf32>
    %34 = arith.divf %33, %32 : vector<1x128xf32>
    %cst_23 = arith.constant 1.000000e+00 : f32
    %35 = vector.broadcast %cst_23 : f32 to vector<1x128xf32>
    %36 = arith.subf %35, %34 : vector<1x128xf32>
    %c0_24 = arith.constant 0 : index
    %c0_25 = arith.constant 0 : index
    %37 = vector.load %arg8[%c0_24, %c0_25] : memref<2x128xf32, #tpu.memory_space<vmem>>, vector<1x128xf32>
    tpu.vector_store %arg8[%c0_24, %c0_25], %36 {strides = array<i32>} : memref<2x128xf32, #tpu.memory_space<vmem>>, vector<1x128xf32>,
    %c1 = arith.constant 1 : index
    %c0_26 = arith.constant 0 : index
    %38 = vector.load %arg8[%c1, %c0_26] : memref<2x128xf32, #tpu.memory_space<vmem>>, vector<1x128xf32>
    tpu.vector_store %arg8[%c1, %c0_26], %34 {strides = array<i32>} : memref<2x128xf32, #tpu.memory_space<vmem>>, vector<1x128xf32>,
    return
  }
  func.func @transform_0(%arg0: i32) -> (i32, i32) {
    %c0_i32 = arith.constant 0 : i32
    %c0_i32_0 = arith.constant 0 : i32
    return %arg0, %c0_i32 : i32, i32
  }
  func.func @transform_1(%arg0: i32) -> (i32, i32) {
    %c0_i32 = arith.constant 0 : i32
    %c0_i32_0 = arith.constant 0 : i32
    %c0_i32_1 = arith.constant 0 : i32
    return %c0_i32, %c0_i32_0 : i32, i32
  }
  func.func @transform_2(%arg0: i32) -> (i32, i32) {
    %c0_i32 = arith.constant 0 : i32
    %c0_i32_0 = arith.constant 0 : i32
    %c0_i32_1 = arith.constant 0 : i32
    return %c0_i32, %c0_i32_0 : i32, i32
  }
  func.func @transform_3(%arg0: i32) -> (i32, i32) {
    %c0_i32 = arith.constant 0 : i32
    %c0_i32_0 = arith.constant 0 : i32
    %c0_i32_1 = arith.constant 0 : i32
    return %c0_i32, %c0_i32_0 : i32, i32
  }
  func.func @transform_4(%arg0: i32) -> (i32, i32) {
    %c0_i32 = arith.constant 0 : i32
    %c0_i32_0 = arith.constant 0 : i32
    %c0_i32_1 = arith.constant 0 : i32
    return %c0_i32, %c0_i32_0 : i32, i32
  }
  func.func @transform_5(%arg0: i32) -> (i32, i32) {
    %c0_i32 = arith.constant 0 : i32
    %c0_i32_0 = arith.constant 0 : i32
    %c0_i32_1 = arith.constant 0 : i32
    return %c0_i32, %c0_i32_0 : i32, i32
  }
  func.func @transform_6(%arg0: i32) -> (i32, i32) {
    %c0_i32 = arith.constant 0 : i32
    %c0_i32_0 = arith.constant 0 : i32
    %c0_i32_1 = arith.constant 0 : i32
    return %c0_i32, %c0_i32_0 : i32, i32
  }
  func.func @transform_7(%arg0: i32) -> (i32, i32) {
    %c0_i32 = arith.constant 0 : i32
    %c0_i32_0 = arith.constant 0 : i32
    return %c0_i32, %arg0 : i32, i32
  }
}

</mosaic_0001>

<bundles_post_ra>
// kernel: tpu_custom_call.1
= control target key start
LH: loop header
LB: loop body
LE: loop exit
PB: predicated region body
PF: predicated region fallthrough
CT: control target
= control target key end

     0   :  { %s606_s0 = inlined_call_operand.vmem [shape: f32[128,30], index: 0, kind: input, shape index: {}]   ;;  %s607_s1 = inlined_call_operand.vmem [shape: f32[10,30], index: 1, kind: input, shape index: {}]   ;;  %s608_s2 = inlined_call_operand.vmem [shape: f32[10,1], index: 2, kind: input, shape index: {}]   ;;  %s609_s3 = inlined_call_operand.vmem [shape: f32[10,10], index: 3, kind: input, shape index: {}]   ;;  %s610_s4 = inlined_call_operand.vmem [shape: f32[10,1], index: 4, kind: input, shape index: {}]   ;;  %s611_s5 = inlined_call_operand.vmem [shape: f32[1,10], index: 5, kind: input, shape index: {}]   ;;  %s612_s6 = inlined_call_operand.<no memory space> [shape: f32[1,1], index: 6, kind: input, shape index: {}]   ;;  %s613_s7 = inlined_call_operand.hbm [shape: f32[2,128], index: 7, kind: output, shape index: {}]  }
   0x1   :  { %v12_v0 = vstv %s612_s6 }
   0x2   :  { %13 = vst [vmem:[#allocation2] sm:$0x1] %v12_v0 }
   0x3   :  { %v44_v1 = vld [vmem:[%s606_s0 + $0x78] sm:$0xff]  ;;  %vm61_vm0 = vcmask 244736   ;;  %v43_v2 = vld [vmem:[%s606_s0 + $0x70] sm:$0xff] }
   0x4   :  { %v60_v3 = vmul.f32 %v44_v1, %v44_v1  ;;  %381 = vmatpush.xpose.msk.msra.mxu1 %vm61_vm0, %v44_v1  ;;  %v59_v4 = vmul.f32 %v43_v2, %v43_v2 }
   0x6   :  { %364 = vmatpush.xpose.msk.msra.mxu0 %vm61_vm0, %v60_v3 }
   0x7   :  { %14 = vsyncpa [#allocation4], 0  ;;  %v42_v5 = vld [vmem:[%s606_s0 + $0x68] sm:$0xff]  ;;  %v41_v7 = vld [vmem:[%s606_s0 + $0x60] sm:$0xff]  ;;  %v442_v22 = vmov 0   ;;  %v443_v37 = vmov 1.0  }
   0x8   :  { %382 = vmatpush.xpose.msk.msra.mxu1 %vm61_vm0, %v43_v2  ;;  %v58_v6 = vmul.f32 %v42_v5, %v42_v5  ;;  %v57_v8 = vmul.f32 %v41_v7, %v41_v7  ;;  %v40_v9 = vld [vmem:[%s606_s0 + $0x58] sm:$0xff]  ;;  %v39_v11 = vld [vmem:[%s606_s0 + $0x50] sm:$0xff]  ;;  %v38_v13 = vld [vmem:[%s606_s0 + $0x48] sm:$0xff]  ;;  %407 = vset.pattern.permute.xlu0 %v442_v22  ;;  %vm263_vm4 = vcmask 1041408   ;;  %vm256_vm5 = vcmask 80896   ;;  %s355_s26 = sshll.u32 %s613_s7, 4  ;;  %s356_s26 = int_to_ptr.hbm [resolvable:$true] %s355_s26 }
   0x9   :  { %v56_v10 = vmul.f32 %v40_v9, %v40_v9  ;;  %v55_v12 = vmul.f32 %v39_v11, %v39_v11  ;;  %v54_v14 = vmul.f32 %v38_v13, %v38_v13  ;;  %v37_v15 = vld [vmem:[%s606_s0 + $0x40] sm:$0xff]  ;;  %v36_v17 = vld [vmem:[%s606_s0 + $0x38] sm:$0xff]  ;;  %v35_v19 = vld [vmem:[%s606_s0 + $0x30] sm:$0xff]  ;;  %408 = vset.pattern.permute.xlu1 %v442_v22  ;;  %409 = vset.pattern.permute.xlu2 %v442_v22 }
   0xa   :  { %365 = vmatpush.xpose.msk.msra.mxu0 %vm61_vm0, %v59_v4  ;;  %v53_v16 = vmul.f32 %v37_v15, %v37_v15  ;;  %v52_v18 = vmul.f32 %v36_v17, %v36_v17  ;;  %v227_v20 = vld [vmem:[%s608_s2 + $0x8] sm:$0x3]  ;;  %v51_v21 = vmul.f32 %v35_v19, %v35_v19  ;;  %v33_v25 = vld [vmem:[%s606_s0 + $0x20] sm:$0xff]  ;;  %v32_v28 = vld [vmem:[%s606_s0 + $0x18] sm:$0xff] }
   0xb   :  { %v34_v23 = vld [vmem:[%s606_s0 + $0x28] sm:$0xff]  ;;  %235 = vperm.xlu0 %407, %v227_v20   ;;  %v226_v26 = vld [vmem:[%s608_s2] sm:$0xff]  ;;  %v49_v27 = vmul.f32 %v33_v25, %v33_v25  ;;  %v48_v29 = vmul.f32 %v32_v28, %v32_v28  ;;  %v31_v30 = vld [vmem:[%s606_s0 + $0x10] sm:$0xff] }
   0xc   :  { %383 = vmatpush.xpose.msk.msra.mxu1 %vm61_vm0, %v42_v5  ;;  %v50_v24 = vmul.f32 %v34_v23, %v34_v23  ;;  %v47_v31 = vmul.f32 %v31_v30, %v31_v30  ;;  %v30_v32 = vld [vmem:[%s606_s0 + $0x8] sm:$0xff]  ;;  %v29_v34 = vld [vmem:[%s606_s0] sm:$0xff] }
   0xd   :  { %v46_v33 = vmul.f32 %v30_v32, %v30_v32  ;;  %v45_v35 = vmul.f32 %v29_v34, %v29_v34  ;;  %v144_v36 = vld [vmem:[%s607_s1] sm:$0xff]  ;;  %v145_v38 = vld [vmem:[%s607_s1 + $0x8] sm:$0x3] }
   0xe   :  { %366 = vmatpush.xpose.msk.msra.mxu0 %vm61_vm0, %v58_v6  ;;  %v245_v41 = vld [vmem:[%s610_s4 + $0x8] sm:$0x3]  ;;  %v244_v48 = vld [vmem:[%s610_s4] sm:$0xff] }
   0xf   :  { %253 = vperm.xlu1 %408, %v245_v41   ;;  %v242_v61 = vld [vmem:[%s609_s3] sm:$0xff]  ;;  %v243_v62 = vld [vmem:[%s609_s3 + $0x8] sm:$0x3]  ;;  %s444_s3 = smov [#allocation3]  }
  0x10   :  { %384 = vmatpush.xpose.msk.msra.mxu1 %vm61_vm0, %v41_v7  ;;  %v293_v63 = vld [vmem:[#allocation2] sm:$0x1] }
  0x11   :  { %296 = vperm.xlu2 %409, %v293_v63  }
  0x12   :  { %367 = vmatpush.xpose.msk.msra.mxu0 %vm61_vm0, %v57_v8  ;;  %v292_v8 = vld [vmem:[%s611_s5] sm:$0x1]  ;;  %s353_s5 = sshll.u32 %s444_s3, 4  ;;  %s354_s5 = int_to_ptr.vmem [resolvable:$true] %s353_s5 }
  0x13   :  { %230 = vperm.xlu0 %407, %v226_v26  }
  0x14   :  { %385 = vmatpush.xpose.msk.msra.mxu1 %vm61_vm0, %v40_v9 }
  0x16   :  { %368 = vmatpush.xpose.msk.msra.mxu0 %vm61_vm0, %v56_v10 }
  0x17   :  { %248 = vperm.xlu1 %408, %v244_v48  }
  0x18   :  { %386 = vmatpush.xpose.msk.msra.mxu1 %vm61_vm0, %v39_v11 }
  0x1a   :  { %369 = vmatpush.xpose.msk.msra.mxu0 %vm61_vm0, %v55_v12 }
  0x1c   :  { %387 = vmatpush.xpose.msk.msra.mxu1 %vm61_vm0, %v38_v13 }
  0x1e   :  { %370 = vmatpush.xpose.msk.msra.mxu0 %vm61_vm0, %v54_v14 }
  0x20   :  { %388 = vmatpush.xpose.msk.msra.mxu1 %vm61_vm0, %v37_v15 }
  0x22   :  { %371 = vmatpush.xpose.msk.msra.mxu0 %vm61_vm0, %v53_v16 }
  0x24   :  { %389 = vmatpush.xpose.msk.msra.mxu1 %vm61_vm0, %v36_v17 }
  0x26   :  { %372 = vmatpush.xpose.msk.msra.mxu0 %vm61_vm0, %v52_v18 }
  0x28   :  { %390 = vmatpush.xpose.msk.msra.mxu1 %vm61_vm0, %v35_v19 }
  0x2a   :  { %373 = vmatpush.xpose.msk.msra.mxu0 %vm61_vm0, %v51_v21 }
  0x2c   :  { %391 = vmatpush.xpose.msk.msra.mxu1 %vm61_vm0, %v34_v23 }
  0x2e   :  { %374 = vmatpush.xpose.msk.msra.mxu0 %vm61_vm0, %v50_v24 }
  0x30   :  { %392 = vmatpush.xpose.msk.msra.mxu1 %vm61_vm0, %v33_v25 }
  0x32   :  { %375 = vmatpush.xpose.msk.msra.mxu0 %vm61_vm0, %v49_v27 }
  0x34   :  { %393 = vmatpush.xpose.msk.msra.mxu1 %vm61_vm0, %v32_v28 }
  0x36   :  { %376 = vmatpush.xpose.msk.msra.mxu0 %vm61_vm0, %v48_v29 }
  0x38   :  { %394 = vmatpush.xpose.msk.msra.mxu1 %vm61_vm0, %v31_v30 }
  0x3a   :  { %377 = vmatpush.xpose.msk.msra.mxu0 %vm61_vm0, %v47_v31 }
  0x3c   :  { %395 = vmatpush.xpose.msk.msra.mxu1 %vm61_vm0, %v30_v32 }
  0x3e   :  { %378 = vmatpush.xpose.msk.msra.mxu0 %vm61_vm0, %v46_v33 }
  0x40   :  { %396 = vmatpush.xpose.msk.msra.mxu1 %vm61_vm0, %v29_v34 }
  0x42   :  { %379 = vmatpush.xpose.msk.msra.mxu0 %vm61_vm0, %v45_v35 }
  0x43   :  { %397 = vmatmul.msk.f32.vlgmr.msra.gmra.mxu1 %vm61_vm0, %v144_v36 }
  0x45   :  { %380 = vmatmul.msk.f32.vlgmr.msra.gmra.mxu0 %vm61_vm0, %v443_v37 }
  0x4b   :  { %398 = vmatmul.msk.f32.gmra.mxu1 %vm61_vm0, %v145_v38 }
  0x6b   :  { %v297_v9 = vpop.permute.xlu2 %296 }
  0x6c   :  { %v299_v10 = vperm.slane %v297_v9, 0 }
  0x7d   :  { %v236_v47 = vpop.permute.xlu0 %235 }
  0x81   :  { %v254_v0 = vpop.permute.xlu1 %253 }
  0x85   :  { %v231_v56 = vpop.permute.xlu0 %230 }
  0x89   :  { %v249_v2 = vpop.permute.xlu1 %248 }
  0xc0   :  { %v217_v44 = vpop.f32.mrf.mxu1 }
  0xc2   :  { %v130_v39 = vpop.f32.mrf.mxu0 }
  0xc3   :  { %v133_v40 = vmax.f32 %v130_v39, 1e-24 }
  0xc5   :  { %410 = vrsqrt.f32 %v133_v40  ;;  %vm140_vm2 = vweird.f32 %v133_v40 }
  0xc8   :  { %v220_v52 = vpop.f32.mrf.mxu1 }
  0xcb   :  { %v411_v42 = vpop.eup %410 }
  0xcc   :  { %v135_v43 = vmul.f32 %v411_v42, %v133_v40  ;;  %vm141_vm1 = vweird.f32 %v411_v42 }
  0xcd   :  { %vm142_vm3 = vmor %vm140_vm2, %vm141_vm1 }
  0xce   :  { %v136_v45 = vmul.f32 %v411_v42, %v135_v43 }
  0xd0   :  { %v137_v46 = vmul.f32 0.5, %v136_v45 }
  0xd2   :  { %v138_v49 = vsub.f32 1.5, %v137_v46 }
  0xd4   :  { %v139_v50 = vmul.f32 %v411_v42, %v138_v49 }
  0xd6   :  { %v143_v51 = vsel %vm142_vm3, %v411_v42, %v139_v50 }
  0xd7   :  { %v223_v53 = vperm.slane %v143_v51, 0 }
  0xd9   :  { %v224_v54 = vmul.f32 %v223_v53, %v217_v44  ;;  %v225_v55 = vmul.f32 %v223_v53, %v220_v52 }
  0xdb   :  { %v238_v57 = vadd.f32 %v231_v56, %v224_v54  ;;  %v239_v58 = vadd.f32 %v236_v47, %v225_v55 }
  0xdd   :  { %v241_v59 = vmax.f32 %v239_v58, 0.0  ;;  %v240_v60 = vmax.f32 %v238_v57, 0.0 }
  0xdf   :  { %399 = vmatpush.msk.msra.mxu2 %vm263_vm4, %v241_v59 }
  0xe1   :  { %282 = vmatpush.msra.mxu2 %v240_v60 }
  0xe2   :  { %400 = vmatmul.msk.f32.vlgmr.msra.gmra.mxu2 %vm256_vm5, %v242_v61 }
  0xea   :  { %401 = vmatmul.msk.f32.gmra.mxu2 %vm256_vm5, %v243_v62 }
 0x165   :  { %v284_v1 = vpop.f32.mrf.mxu2 }
 0x166   :  { %v285_v4 = vadd.f32 %v284_v1, %v249_v2 }
 0x168   :  { %v290_v7 = vmax.f32 %v285_v4, 0.0 }
 0x16d   :  { %v287_v3 = vpop.f32.mrf.mxu2 }
 0x16e   :  { %v288_v5 = vadd.f32 %v287_v3, %v254_v0 }
 0x170   :  { %v291_v6 = vmax.f32 %v288_v5, 0.0 }
 0x172   :  { %402 = vmatpush.msk.msra.mxu3 %vm263_vm4, %v291_v6 }
 0x174   :  { %321 = vmatpush.msra.mxu3 %v290_v7 }
 0x175   :  { %403 = vmatmul.msk.f32.vlgmr.msra.gmra.mxu3 %vm256_vm5, %v292_v8 }
 0x1f8   :  { %v323_v11 = vpop.f32.mrf.mxu3 }
 0x1f9   :  { %v324_v12 = vadd.f32 %v323_v11, %v299_v10 }
 0x1fb   :  { %v326_v13 = vsub.f32 0.0, %v324_v12 }
 0x1fd   :  { %v327_v14 = vmul.f32 1.442695, %v326_v13 }
 0x1ff   :  { %412 = vpow2.f32 %v327_v14 }
 0x205   :  { %v413_v15 = vpop.eup %412 }
 0x206   :  { %v329_v16 = vadd.f32 1.0, %v413_v15 }
 0x208   :  { %414 = vrcp.f32 %v329_v16  ;;  %v341_v20 = vand.u32 2147483648, %v329_v16  ;;  %v339_v22 = vand.u32 2147483647, %v329_v16  ;;  %vm335_vm7 = vweird.f32 %v329_v16 }
 0x20a   :  { %v342_v24 = vor.u32 1.1754944e-38, %v341_v20  ;;  %vm340_vm9 = vcmp.eq.f32.partialorder %v339_v22, 8.507059e+37 }
 0x20e   :  { %v415_v17 = vpop.eup %414 }
 0x20f   :  { %v331_v18 = vmul.f32 %v415_v17, %v329_v16  ;;  %vm336_vm6 = vweird.f32 %v415_v17 }
 0x210   :  { %vm337_vm8 = vmor %vm335_vm7, %vm336_vm6 }
 0x211   :  { %v332_v19 = vsub.f32 1.0, %v331_v18 }
 0x213   :  { %v333_v21 = vmul.f32 %v415_v17, %v332_v19 }
 0x215   :  { %v334_v23 = vadd.f32 %v415_v17, %v333_v21 }
 0x217   :  { %v338_v25 = vsel %vm337_vm8, %v415_v17, %v334_v23 }
 0x218   :  { %v343_v26 = vsel %vm340_vm9, %v342_v24, %v338_v25 }
 0x219   :  { %v345_v27 = vsub.f32 1.0, %v343_v26  ;;  %347 = vst [vmem:[#allocation3 + $0x1] sm:$0x1] %v343_v26 }
 0x21b   :  { %346 = vst [vmem:[#allocation3] sm:$0x1] %v345_v27 }
 0x21c   :  { %358 = dma.vmem_to_hbm [thread:$0]  %s354_s5, 32, %s356_s26, [#allocation4]  }
 0x21d   :  { %440 = dma.done.wait [#allocation4], 32  }
 0x21e   :  { %441 = vsyncadd [#allocation4], 4294967264 }
 0x21f   :  { %363 = vsyncpa [#allocation4], 1 }

</bundles_post_ra>
